<compile_context>
chip_gen: v7x
topology: tpu7x:2x2x1
jax: 0.10.0
libtpu: 0.0.40
codegen_flags: <defaults>
</compile_context>

<pallas_src>
import math
import functools

import jax
import jax.numpy as jnp
from jax import lax
from jax.experimental import pallas as pl
from jax.experimental.pallas import tpu as pltpu


# ----------------------------- configuration ------------------------------
T_STEPS    = 16     # number of diffusion timesteps (embedding table rows)
D_MODEL    = 32     # sinusoidal embedding width (must be even)
DIM        = 64     # hidden / output width of the two Linear layers
BIT        = 8      # kept for API parity (quantization bits; unused in IF sim)
SPIKE_TIME = 3      # number of IF integration steps
ALPHA      = 1.0    # IF firing threshold (deterministic init)
BATCH      = 8      # number of time indices per call

LANE       = 128    # TPU lane width; feature axes are zero-padded to this


# ------------------------------ Pallas kernel ------------------------------
def _s_time_embedding_kernel(t_ref, pre_table_ref, w2_ref, b2_ref, out_ref,
                             *, spike_time, alpha):
    # t_ref        : (B, 1) int32
    # pre_table_ref: (T, LANE) f32   -- emb_table @ W1 + b1, zero-padded lanes
    # w2_ref       : (LANE, LANE) f32
    # b2_ref       : (1, LANE) f32
    # out_ref      : (B, LANE) f32
    B = out_ref.shape[0]
    T = pre_table_ref.shape[0]

    # 1) Fused embedding lookup + Linear1: one-hot(t) @ pre_table on the MXU.
    #    Exact row selection (all other terms are 0.0 * x), so this equals
    #    jnp.take(pre_table, t) bit-for-bit for in-range t.
    t = t_ref[...]                                               # (B, 1)
    col = lax.broadcasted_iota(jnp.int32, (B, T), 1)             # (B, T)
    onehot = (col == t).astype(jnp.float32)                      # (B, T)
    pre = jnp.dot(onehot, pre_table_ref[...],
                  preferred_element_type=jnp.float32)            # (B, LANE)

    # 2) IF neuron: integrate-and-fire over `spike_time` steps (VPU, unrolled).
    #    Reset-by-subtraction, spike amplitude alpha, rate-averaged readout.
    #    Padded lanes carry zeros and never reach the threshold
    #    (0.5*alpha < alpha), so they stay exactly zero.
    a = jnp.float32(alpha)
    mem = jnp.full_like(pre, 0.5 * alpha)
    acc = jnp.zeros_like(pre)
    for _ in range(spike_time):
        mem = mem + pre
        spike = jnp.where(mem >= a, a, jnp.float32(0.0))
        mem = mem - spike
        acc = acc + spike
    s_avg = acc * jnp.float32(1.0 / spike_time)

    # 3) Linear 2 (MXU); lane-dense (B, 128) store.
    out = jnp.dot(s_avg, w2_ref[...],
                  preferred_element_type=jnp.float32) + b2_ref[...]
    out_ref[...] = out.astype(out_ref.dtype)


# --------------------------- one-time param prep ----------------------------
def prepare_params(emb_table, w1, b1, w2, b2):
    """One-time preparation: fold Linear1 into the embedding table and pad all
    feature axes to the 128-lane width. Call ONCE at init; pass the result to
    every kernel invocation (no per-call padding / HBM writes)."""
    T, d_model = emb_table.shape
    dim = w1.shape[1]
    assert dim <= LANE and d_model <= LANE

    # Fold: pre_table[t] = emb_table[t] @ W1 + b1   (exact f32, done offline)
    pre_table = (jnp.dot(emb_table, w1, precision=lax.Precision.HIGHEST)
                 + b1[None, :])                                   # (T, dim)

    pre_table_p = jnp.zeros((T, LANE), jnp.float32).at[:, :dim].set(pre_table)
    w2_p = jnp.zeros((LANE, LANE), jnp.float32).at[:dim, :dim].set(w2)
    b2_p = jnp.zeros((1, LANE), jnp.float32).at[:, :dim].set(b2[None, :])
    return {"pre_table_p": pre_table_p, "w2_p": w2_p, "b2_p": b2_p, "dim": dim}


# ------------------------------ per-call wrapper ----------------------------
def s_time_embedding_pallas_padded(t_idx, params,
                                   *, spike_time=SPIKE_TIME, alpha=ALPHA):
    """t_idx: (B,) int32 in [0, T). Returns the lane-dense padded (B, 128)
    result; columns >= params['dim'] are exactly zero. Slice at the consumer
    (or not at all) instead of per call."""
    B = t_idx.shape[0]
    t_col = t_idx.astype(jnp.int32).reshape(B, 1)

    kernel = functools.partial(
        _s_time_embedding_kernel, spike_time=spike_time, alpha=alpha)

    # Gridless call: whole arrays live in VMEM (total footprint < 100 KB),
    # nothing to pipeline, no double-buffer prologue.
    in_specs = [pl.BlockSpec(memory_space=pltpu.MemorySpace.VMEM)
                for _ in range(4)]
    return pl.pallas_call(
        kernel,
        out_shape=jax.ShapeDtypeStruct((B, LANE), jnp.float32),
        in_specs=in_specs,
        out_specs=pl.BlockSpec(memory_space=pltpu.MemorySpace.VMEM),
    )(t_col, params["pre_table_p"], params["w2_p"], params["b2_p"])


def precompute_s_time_embedding_table(params, T,
                                      *, spike_time=SPIKE_TIME, alpha=ALPHA):
    """One kernel call over all T timesteps -> (T, dim) result table.
    In a diffusion sampling loop, replace per-step kernel calls with a lookup
    into this tiny table (the output depends only on t). This is the
    recommended production path."""
    all_t = jnp.arange(T, dtype=jnp.int32)
    out_p = s_time_embedding_pallas_padded(all_t, params,
                                           spike_time=spike_time, alpha=alpha)
    return out_p[:, :params["dim"]]        # slice ONCE, on the cached table


# --------------------------- parameter construction ------------------------
def make_sinusoidal_table(T, d_model):
    assert d_model % 2 == 0
    freqs = jnp.exp(-(jnp.arange(0, d_model, 2, dtype=jnp.float32) / d_model)
                    * math.log(10000.0))                       # (half,)
    pos = jnp.arange(T, dtype=jnp.float32)                     # (T,)
    ang = pos[:, None] * freqs[None, :]                        # (T, half)
    emb = jnp.stack([jnp.sin(ang), jnp.cos(ang)], axis=-1)     # (T, half, 2)
    return emb.reshape(T, d_model)                             # (T, d_model)


def xavier_uniform(key, fan_in, fan_out, shape):
    bound = math.sqrt(6.0 / (fan_in + fan_out))
    return jax.random.uniform(key, shape, jnp.float32, -bound, bound)


# ---------------------------------- main -----------------------------------
if __name__ == "__main__":
    key = jax.random.PRNGKey(0)
    k1, k2, kt = jax.random.split(key, 3)

    emb_table = make_sinusoidal_table(T_STEPS, D_MODEL)

    # torch Linear(d_model, dim): weight (dim, d_model), xavier_uniform, zero
    # bias. Stored pre-transposed as (d_model, dim) for the kernel matmul.
    w1 = xavier_uniform(k1, D_MODEL, DIM, (D_MODEL, DIM))
    b1 = jnp.zeros((DIM,), jnp.float32)
    w2 = xavier_uniform(k2, DIM, DIM, (DIM, DIM))
    b2 = jnp.zeros((DIM,), jnp.float32)

    t_idx = jax.random.randint(kt, (BATCH,), 0, T_STEPS, dtype=jnp.int32)

    # One-time param prep (padding + W1/b1 folding) — NOT on the per-call path.
    params = jax.block_until_ready(prepare_params(emb_table, w1, b1, w2, b2))

    # Fused kernel (gather + folded Linear1 + IF + Linear2 in one pallas_call).
    out_p = s_time_embedding_pallas_padded(t_idx, params)
    out_p = jax.block_until_ready(out_p)
    out = out_p[:, :DIM]     # sliced once here only for the parity check

    # Cached-table path (one kernel call for all 16 timesteps, then lookup).
    full_table = precompute_s_time_embedding_table(params, T_STEPS)
    full_table = jax.block_until_ready(full_table)
    out_cached = full_table[t_idx]

    # Reference check in plain JAX (same semantics as the original module).
    emb = jnp.take(emb_table, t_idx, axis=0)
    pre = jnp.dot(emb, w1, precision=lax.Precision.HIGHEST) + b1
    mem = jnp.full_like(pre, 0.5 * ALPHA)
    acc = jnp.zeros_like(pre)
    for _ in range(SPIKE_TIME):
        mem = mem + pre
        spike = jnp.where(mem >= ALPHA, 0.0 + ALPHA, 0.0)
        mem = mem - spike
        acc = acc + spike
    ref = jnp.dot(acc / SPIKE_TIME, w2, precision=lax.Precision.HIGHEST) + b2

    assert out.shape == (BATCH, DIM)
    assert full_table.shape == (T_STEPS, DIM)
    # Padded lanes must be exactly zero (lane-dense store, zero-padded weights).
    assert jnp.all(out_p[:, DIM:] == 0.0)
    assert jnp.allclose(out, ref, atol=1e-4, rtol=1e-4)
    assert jnp.allclose(out_cached, ref, atol=1e-4, rtol=1e-4)

    print("KERNEL_OK")
</pallas_src>

<mosaic_0001>
module attributes {stable_mosaic.version = 11 : i64} {
  func.func @_s_time_embedding_kernel(%arg0: memref<8x1xi32, #tpu.memory_space<vmem>>, %arg1: memref<16x128xf32, #tpu.memory_space<vmem>>, %arg2: memref<128x128xf32, #tpu.memory_space<vmem>>, %arg3: memref<1x128xf32, #tpu.memory_space<vmem>>, %arg4: memref<8x128xf32, #tpu.memory_space<vmem>>) attributes {dimension_semantics = [], scalar_prefetch = 0 : i64, scratch_operands = 0 : i64, tpu.core_type = #tpu.core_type<tc>} {
    %c0 = arith.constant 0 : index
    %c0_0 = arith.constant 0 : index
    %0 = vector.load %arg0[%c0, %c0_0] : memref<8x1xi32, #tpu.memory_space<vmem>>, vector<8x1xi32>
    %1 = tpu.iota {dimensions = array<i32: 1>} : vector<8x16xi32>
    %2 = vector.broadcast %0 : vector<8x1xi32> to vector<8x16xi32>
    %3 = arith.cmpi eq, %1, %2 : vector<8x16xi32>
    %4 = arith.extui %3 : vector<8x16xi1> to vector<8x16xi32>
    %5 = arith.sitofp %4 : vector<8x16xi32> to vector<8x16xf32>
    %c0_1 = arith.constant 0 : index
    %c0_2 = arith.constant 0 : index
    %6 = vector.load %arg1[%c0_1, %c0_2] : memref<16x128xf32, #tpu.memory_space<vmem>>, vector<16x128xf32>
    %cst = arith.constant dense<0.000000e+00> : vector<8x128xf32>
    %7 = tpu.matmul %5, %6, %cst {dimension_numbers = #tpu.dot_dimension_numbers<[1], [0], [0], [1], [0, 0, 1, 1], [], []>} : vector<8x16xf32>, vector<16x128xf32>, vector<8x128xf32> -> vector<8x128xf32>
    %cst_3 = arith.constant 5.000000e-01 : f32
    %8 = vector.broadcast %cst_3 : f32 to vector<8x128xf32>
    %cst_4 = arith.constant 0.000000e+00 : f32
    %9 = vector.broadcast %cst_4 : f32 to vector<8x128xf32>
    %10 = arith.addf %8, %7 : vector<8x128xf32>
    %cst_5 = arith.constant 1.000000e+00 : f32
    %11 = vector.broadcast %cst_5 : f32 to vector<8x128xf32>
    %12 = arith.cmpf oge, %10, %11 : vector<8x128xf32>
    %cst_6 = arith.constant 1.000000e+00 : f32
    %cst_7 = arith.constant 0.000000e+00 : f32
    %13 = vector.broadcast %cst_6 : f32 to vector<8x128xf32>
    %14 = vector.broadcast %cst_7 : f32 to vector<8x128xf32>
    %15 = arith.select %12, %13, %14 : vector<8x128xi1>, vector<8x128xf32>
    %16 = arith.subf %10, %15 : vector<8x128xf32>
    %17 = arith.addf %9, %15 : vector<8x128xf32>
    %18 = arith.addf %16, %7 : vector<8x128xf32>
    %cst_8 = arith.constant 1.000000e+00 : f32
    %19 = vector.broadcast %cst_8 : f32 to vector<8x128xf32>
    %20 = arith.cmpf oge, %18, %19 : vector<8x128xf32>
    %cst_9 = arith.constant 1.000000e+00 : f32
    %cst_10 = arith.constant 0.000000e+00 : f32
    %21 = vector.broadcast %cst_9 : f32 to vector<8x128xf32>
    %22 = vector.broadcast %cst_10 : f32 to vector<8x128xf32>
    %23 = arith.select %20, %21, %22 : vector<8x128xi1>, vector<8x128xf32>
    %24 = arith.subf %18, %23 : vector<8x128xf32>
    %25 = arith.addf %17, %23 : vector<8x128xf32>
    %26 = arith.addf %24, %7 : vector<8x128xf32>
    %cst_11 = arith.constant 1.000000e+00 : f32
    %27 = vector.broadcast %cst_11 : f32 to vector<8x128xf32>
    %28 = arith.cmpf oge, %26, %27 : vector<8x128xf32>
    %cst_12 = arith.constant 1.000000e+00 : f32
    %cst_13 = arith.constant 0.000000e+00 : f32
    %29 = vector.broadcast %cst_12 : f32 to vector<8x128xf32>
    %30 = vector.broadcast %cst_13 : f32 to vector<8x128xf32>
    %31 = arith.select %28, %29, %30 : vector<8x128xi1>, vector<8x128xf32>
    %32 = arith.addf %25, %31 : vector<8x128xf32>
    %cst_14 = arith.constant 0.333333343 : f32
    %33 = vector.broadcast %cst_14 : f32 to vector<8x128xf32>
    %34 = arith.mulf %32, %33 : vector<8x128xf32>
    %c0_15 = arith.constant 0 : index
    %c0_16 = arith.constant 0 : index
    %35 = vector.load %arg2[%c0_15, %c0_16] : memref<128x128xf32, #tpu.memory_space<vmem>>, vector<128x128xf32>
    %cst_17 = arith.constant dense<0.000000e+00> : vector<8x128xf32>
    %36 = tpu.matmul %34, %35, %cst_17 {dimension_numbers = #tpu.dot_dimension_numbers<[1], [0], [0], [1], [0, 0, 1, 1], [], []>} : vector<8x128xf32>, vector<128x128xf32>, vector<8x128xf32> -> vector<8x128xf32>
    %c0_18 = arith.constant 0 : index
    %c0_19 = arith.constant 0 : index
    %37 = vector.load %arg3[%c0_18, %c0_19] : memref<1x128xf32, #tpu.memory_space<vmem>>, vector<1x128xf32>
    %38 = vector.broadcast %37 : vector<1x128xf32> to vector<8x128xf32>
    %39 = arith.addf %36, %38 : vector<8x128xf32>
    %c0_20 = arith.constant 0 : index
    %c0_21 = arith.constant 0 : index
    %40 = vector.load %arg4[%c0_20, %c0_21] : memref<8x128xf32, #tpu.memory_space<vmem>>, vector<8x128xf32>
    tpu.vector_store %arg4[%c0_20, %c0_21], %39 {strides = array<i32>} : memref<8x128xf32, #tpu.memory_space<vmem>>, vector<8x128xf32>,
    return
  }
}

</mosaic_0001>

<bundles_post_ra>
// kernel: tpu_custom_call.1
= control target key start
LH: loop header
LB: loop body
LE: loop exit
PB: predicated region body
PF: predicated region fallthrough
CT: control target
= control target key end

     0   :  { %9 = vsyncpa [#allocation3], 0  ;;  %s512_s0 = inlined_call_operand.vmem [shape: s32[8,1], index: 0, kind: input, shape index: {}]   ;;  %s513_s1 = inlined_call_operand.hbm [shape: f32[16,128], index: 1, kind: input, shape index: {}]   ;;  %s514_s2 = inlined_call_operand.hbm [shape: f32[128,128], index: 2, kind: input, shape index: {}]   ;;  %s515_s3 = inlined_call_operand.vmem [shape: f32[1,128], index: 3, kind: input, shape index: {}]   ;;  %s516_s4 = inlined_call_operand.hbm [shape: f32[8,128], index: 4, kind: output, shape index: {}]  }
   0x1   :  { %10 = vsyncpa [#allocation6], 0 }
   0x2   :  { %11 = vsyncpa [#allocation4], 0  ;;  %s430_s15 = smov [#allocation2]   ;;  %s358_s19 = scalar_lea.hbm %s513_s1, 256 }
   0x3   :  { %s19_s16 = sshll.u32 %s430_s15, 4  ;;  %p359_p0 = scmp.ne.s32.totalorder %s513_s1, %s358_s19  ;;  %s20_s16 = int_to_ptr.vmem [resolvable:$true] %s19_s16 }
   0x4   :  { %p362_p1 = scmp.lt.u32.totalorder %s358_s19, %s513_s1 }
   0x6   :  { %p364_p2 = pnand %p362_p1, %p359_p0 }
   0x8   :  { %367 = shalt.err (!%p364_p2)
}
   0x9   :  { %s368_s24 = scalar_lea.vmem %s20_s16, 256  ;;  %p373_p4 = scmp.lt.s32.totalorder %s20_s16, %s20_s16 }
   0xa   :  { %p369_p3 = scmp.ne.s32.totalorder %s20_s16, %s368_s24  ;;  %p374_p5 = scmp.lt.s32.totalorder %s368_s24, %s368_s24 }
   0xc   :  { %p375_p6 = por %p374_p5, %p373_p4 }
   0xe   :  { %p376_p7 = pnand %p375_p6, %p369_p3 }
  0x10   :  { %379 = shalt.err (!%p376_p7)
}
  0x11   :  { %s431_s25 = smov 128   ;;  %s432_s26 = smov 8  }
  0x12   :  { %25 = dma.hbm_to_vmem [thread:$0]  %s513_s1, 256, %s20_s16, [#allocation3], %s431_s25, %s431_s25, %s432_s26  }
  0x13   :  { %s433_s29 = smov [#allocation5]   ;;  %s380_s7 = scalar_lea.hbm %s514_s2, 2048 }
  0x14   :  { %s31_s30 = sshll.u32 %s433_s29, 4  ;;  %p381_p8 = scmp.ne.s32.totalorder %s514_s2, %s380_s7  ;;  %s32_s30 = int_to_ptr.vmem [resolvable:$true] %s31_s30 }
  0x15   :  { %p384_p9 = scmp.lt.u32.totalorder %s380_s7, %s514_s2 }
  0x17   :  { %p386_p10 = pnand %p384_p9, %p381_p8 }
  0x19   :  { %389 = shalt.err (!%p386_p10)
}
  0x1a   :  { %s390_s12 = scalar_lea.vmem %s32_s30, 2048  ;;  %p395_p12 = scmp.lt.s32.totalorder %s32_s30, %s32_s30 }
  0x1b   :  { %p391_p11 = scmp.ne.s32.totalorder %s32_s30, %s390_s12  ;;  %p396_p13 = scmp.lt.s32.totalorder %s390_s12, %s390_s12 }
  0x1d   :  { %p397_p0 = por %p396_p13, %p395_p12 }
  0x1f   :  { %p398_p1 = pnand %p397_p0, %p391_p11 }
  0x21   :  { %401 = shalt.err (!%p398_p1)
}
  0x22   :  { %37 = dma.hbm_to_vmem [thread:$0]  %s514_s2, 2048, %s32_s30, [#allocation6], %s431_s25, %s431_s25, %s432_s26  }
  0x23   :  { %424 = dma.done.wait [#allocation3], 256  }
  0x24   :  { %425 = vsyncadd [#allocation3], 4294967040 }
  0x25   :  { %426 = dma.done.wait [#allocation6], 2048  }
  0x26   :  { %427 = vsyncadd [#allocation6], 4294965248  ;;  %v434_v0 = vmov 0   ;;  %v435_v1 = vmov 0.0|0.0   ;;  %v46_v2 = vld [vmem:[%s512_s0] sm:$0xff]  ;;  %v55_v3 = vld [vmem:[#allocation2] sm:$0xff]  ;;  %v47_v16 = vlaneseq }
  0x27   :  { %357 = vset.pattern.permute.xlu0 %v434_v0  ;;  %321 = vmatprep.subr.bf16.mxu0 %v435_v1  ;;  %v56_v4 = vld [vmem:[#allocation2 + $0x8] sm:$0xff]  ;;  %vm436_vm0 = vmmov 0   ;;  %v437_v6 = vmov 0.0   ;;  %v146_v7 = vld [vmem:[#allocation5] sm:$0xff]  ;;  %v147_v8 = vld [vmem:[#allocation5 + $0x8] sm:$0xff]  ;;  %vm57_vm1 = vcmask 130048  }
  0x28   :  { %324 = vmatprep.subr.bf16.mxu1 %v435_v1  ;;  %50 = vperm.xlu0 %357, %v46_v2   ;;  %v322_v5 = vpack.c.bf16 %v56_v4, %v55_v3  ;;  %v148_v9 = vld [vmem:[#allocation5 + $0x10] sm:$0xff]  ;;  %v325_v10 = vpack.c.bf16 %v147_v8, %v146_v7  ;;  %v149_v11 = vld [vmem:[#allocation5 + $0x18] sm:$0xff]  ;;  %v150_v13 = vld [vmem:[#allocation5 + $0x20] sm:$0xff]  ;;  %v48_v17 = vand.u32 127, %v47_v16  ;;  %s438_s16 = smov [#allocation7]  }
  0x29   :  { %283 = vmatprep.mubr.msk.f32.mxu0 %vm436_vm0, %v437_v6  ;;  %318 = vmatprep.mubr.msk.f32.mxu1 %vm436_vm0, %v437_v6  ;;  %v328_v12 = vpack.c.bf16 %v149_v11, %v148_v9  ;;  %v151_v14 = vld [vmem:[#allocation5 + $0x28] sm:$0xff]  ;;  %v152_v20 = vld [vmem:[#allocation5 + $0x30] sm:$0xff]  ;;  %v153_v21 = vld [vmem:[#allocation5 + $0x38] sm:$0xff]  ;;  %s246_s17 = sshll.u32 %s438_s16, 4  ;;  %s247_s17 = int_to_ptr.vmem [resolvable:$true] %s246_s17 }
  0x2a   :  { %323 = vmatpush3.bf16.msra.mxu0 %v322_v5  ;;  %326 = vmatpush3.bf16.msra.mxu1 %v325_v10  ;;  %v331_v15 = vpack.c.bf16 %v151_v14, %v150_v13  ;;  %v334_v22 = vpack.c.bf16 %v153_v21, %v152_v20  ;;  %v154_v23 = vld [vmem:[#allocation5 + $0x40] sm:$0xff]  ;;  %v155_v24 = vld [vmem:[#allocation5 + $0x48] sm:$0xff]  ;;  %v156_v26 = vld [vmem:[#allocation5 + $0x50] sm:$0xff]  ;;  %s402_s18 = scalar_lea.vmem %s247_s17, 128  ;;  %p407_p3 = scmp.lt.s32.totalorder %s247_s17, %s247_s17 }
  0x2b   :  { %327 = vmatprep.subr.bf16.mxu1 %v435_v1  ;;  %v337_v25 = vpack.c.bf16 %v155_v24, %v154_v23  ;;  %v157_v27 = vld [vmem:[#allocation5 + $0x58] sm:$0xff]  ;;  %v158_v29 = vld [vmem:[#allocation5 + $0x60] sm:$0xff]  ;;  %v159_v30 = vld [vmem:[#allocation5 + $0x68] sm:$0xff]  ;;  %p403_p2 = scmp.ne.s32.totalorder %s247_s17, %s402_s18  ;;  %p408_p4 = scmp.lt.s32.totalorder %s402_s18, %s402_s18 }
  0x2c   :  { %v340_v28 = vpack.c.bf16 %v157_v27, %v156_v26  ;;  %v343_v31 = vpack.c.bf16 %v159_v30, %v158_v29  ;;  %v160_v32 = vld [vmem:[#allocation5 + $0x70] sm:$0xff]  ;;  %v161_v33 = vld [vmem:[#allocation5 + $0x78] sm:$0xff]  ;;  %v258_v48 = vld [vmem:[%s515_s3] ss:$0 sm:$0xff] }
  0x2d   :  { %v346_v34 = vpack.c.bf16 %v161_v33, %v160_v32  ;;  %p409_p5 = por %p408_p4, %p407_p3 }
  0x2e   :  { %329 = vmatpush3.bf16.msra.mxu1 %v328_v12 }
  0x2f   :  { %330 = vmatprep.subr.bf16.mxu1 %v435_v1  ;;  %p410_p6 = pnand %p409_p5, %p403_p2 }
  0x32   :  { %332 = vmatpush3.bf16.msra.mxu1 %v331_v15 }
  0x33   :  { %333 = vmatprep.subr.bf16.mxu1 %v435_v1 }
  0x36   :  { %335 = vmatpush3.bf16.msra.mxu1 %v334_v22 }
  0x37   :  { %336 = vmatprep.subr.bf16.mxu1 %v435_v1 }
  0x3a   :  { %338 = vmatpush3.bf16.msra.mxu1 %v337_v25 }
  0x3b   :  { %339 = vmatprep.subr.bf16.mxu1 %v435_v1 }
  0x3e   :  { %341 = vmatpush3.bf16.msra.mxu1 %v340_v28 }
  0x3f   :  { %342 = vmatprep.subr.bf16.mxu1 %v435_v1 }
  0x42   :  { %344 = vmatpush3.bf16.msra.mxu1 %v343_v31 }
  0x43   :  { %345 = vmatprep.subr.bf16.mxu1 %v435_v1 }
  0x46   :  { %347 = vmatpush3.bf16.msra.mxu1 %v346_v34 }
  0xa7   :  { %v51_v18 = vpop.permute.xlu0 %50 }
  0xa8   :  { %vm52_vm2 = vcmp.eq.s32.totalorder %v48_v17, %v51_v18 }
  0xa9   :  { %v256_v19 = vsel %vm52_vm2, 1.0, %v437_v6 }
  0xaa   :  { %284 = vmatmul.mubr.msk.f32.vlgmr.msra.gmra.mrb[0].mxu0 %vm57_vm1, %v256_v19 }
 0x17d   :  { %v127_v35 = vpop.f32.mrb[0].mxu0 }
 0x17e   :  { %v131_v36 = vadd.f32 0.5, %v127_v35  ;;  %v285_v37 = vpop.f32.mrb[1].mxu0 }
 0x180   :  { %vm132_vm3 = vcmp.ge.f32.partialorder %v131_v36, 1.0 }
 0x181   :  { %v133_v38 = vsel %vm132_vm3, 1.0, %v437_v6 }
 0x182   :  { %v134_v39 = vsub.f32 %v131_v36, %v133_v38 }
 0x184   :  { %v136_v40 = vadd.f32 %v134_v39, %v127_v35 }
 0x186   :  { %vm137_vm4 = vcmp.ge.f32.partialorder %v136_v40, 1.0 }
 0x187   :  { %v138_v41 = vsel %vm137_vm4, 1.0, %v437_v6 }
 0x188   :  { %v139_v42 = vsub.f32 %v136_v40, %v138_v41  ;;  %v140_v44 = vadd.f32 %v138_v41, %v133_v38 }
 0x18a   :  { %v141_v43 = vadd.f32 %v139_v42, %v127_v35 }
 0x18c   :  { %vm142_vm5 = vcmp.ge.f32.partialorder %v141_v43, 1.0 }
 0x18d   :  { %v143_v45 = vsel %vm142_vm5, 1.0, %v437_v6 }
 0x18e   :  { %v144_v46 = vadd.f32 %v143_v45, %v140_v44 }
 0x190   :  { %v145_v47 = vmul.f32 0.33333334, %v144_v46 }
 0x192   :  { %319 = vmatmul.mubr.f32.vlgmr.msra.gmra.mrb[0].mxu1 %v145_v47 }
 0x265   :  { %v235_v49 = vpop.f32.mrb[0].mxu1 }
 0x266   :  { %v236_v50 = vadd.f32 %v258_v48, %v235_v49  ;;  %v320_v51 = vpop.f32.mrb[1].mxu1 }
 0x268   :  { %239 = vst [vmem:[#allocation7] sm:$0xff] %v236_v50 }
 0x269   :  { %413 = shalt.err (!%p410_p6)
}
 0x26a   :  { %s414_s21 = scalar_lea.hbm %s516_s4, 128 }
 0x26b   :  { %p415_p7 = scmp.ne.s32.totalorder %s516_s4, %s414_s21  ;;  %p418_p8 = scmp.lt.u32.totalorder %s414_s21, %s516_s4 }
 0x26d   :  { %p420_p9 = pnand %p418_p8, %p415_p7 }
 0x26f   :  { %423 = shalt.err (!%p420_p9)
}
 0x270   :  { %249 = dma.vmem_to_hbm [thread:$0]  %s247_s17, 128, %s516_s4, [#allocation4]  }
 0x271   :  { %428 = dma.done.wait [#allocation4], 128  }
 0x272   :  { %429 = vsyncadd [#allocation4], 4294967168 }
 0x273   :  { %253 = vsyncpa [#allocation3], 1 }
 0x274   :  { %254 = vsyncpa [#allocation6], 1 }
 0x275   :  { %255 = vsyncpa [#allocation4], 1 }

</bundles_post_ra>
